<compile_context>
chip_gen: v6e
topology: v6e:2x2x1
jax: 0.10.0
libtpu: 0.0.40
codegen_flags: <defaults>
</compile_context>

<pallas_src>
import math
import functools

import jax
import jax.numpy as jnp
from jax.experimental import pallas as pl
from jax.experimental.pallas import tpu as pltpu


# -----------------------------------------------------------------------------
# Kernel
# -----------------------------------------------------------------------------
def qnetwork_kernel(s_ref, a_ref,
                    w1s_ref, w1a_ref, b1_ref,
                    w2_ref, b2_ref,
                    w3_ref, b3_ref,
                    out_ref):
    """Fused twin-Q MLP for one batch tile (batch on lanes).

    h   = relu(W1s @ s_t + W1a @ a_t + b1)     # (2H, TB)
    h   = relu(W2_blockdiag @ h + b2)          # (2H, TB)
    out = W3 @ h + b3                          # (2, TB) -> rows [q1; q2]
    """
    cdt = w1s_ref.dtype  # compute dtype (bf16); accumulation stays in f32.

    s = s_ref[...].astype(cdt)   # (n_in,  TB)
    a = a_ref[...].astype(cdt)   # (n_act, TB)

    # Layer 1 (both Q branches at once): (2H, TB) f32.
    h = jnp.dot(w1s_ref[...], s, preferred_element_type=jnp.float32)
    h = h + jnp.dot(w1a_ref[...], a, preferred_element_type=jnp.float32)
    h = jnp.maximum(h + b1_ref[...], 0.0).astype(cdt)

    # Layer 2 (block-diagonal fused twin weight): (2H, TB).
    h = jnp.dot(w2_ref[...], h, preferred_element_type=jnp.float32) + b2_ref[...]
    h = jnp.maximum(h, 0.0).astype(cdt)

    # Layer 3: (2, TB); row 0 = q1, row 1 = q2. Lane-dense store.
    out = jnp.dot(w3_ref[...], h, preferred_element_type=jnp.float32) + b3_ref[...]
    out_ref[...] = out.astype(out_ref.dtype)


# -----------------------------------------------------------------------------
# Parameter init (PyTorch layout: weight (out_features, in_features), bias 0)
# -----------------------------------------------------------------------------
def _xavier_uniform(key, fan_out, fan_in, gain=0.1, dtype=jnp.float32):
    bound = gain * math.sqrt(6.0 / (fan_in + fan_out))
    return jax.random.uniform(key, (fan_out, fan_in), dtype, -bound, bound)


def init_qnetwork_params(key, num_inputs, num_actions, hidden_dim,
                         dtype=jnp.float32):
    d_in = num_inputs + num_actions
    ks = jax.random.split(key, 6)
    return {
        "w1": _xavier_uniform(ks[0], hidden_dim, d_in, dtype=dtype),
        "b1": jnp.zeros((hidden_dim,), dtype),
        "w2": _xavier_uniform(ks[1], hidden_dim, hidden_dim, dtype=dtype),
        "b2": jnp.zeros((hidden_dim,), dtype),
        "w3": _xavier_uniform(ks[2], 1, hidden_dim, dtype=dtype),
        "b3": jnp.zeros((1,), dtype),
        "w4": _xavier_uniform(ks[3], hidden_dim, d_in, dtype=dtype),
        "b4": jnp.zeros((hidden_dim,), dtype),
        "w5": _xavier_uniform(ks[4], hidden_dim, hidden_dim, dtype=dtype),
        "b5": jnp.zeros((hidden_dim,), dtype),
        "w6": _xavier_uniform(ks[5], 1, hidden_dim, dtype=dtype),
        "b6": jnp.zeros((1,), dtype),
    }


def pack_qnetwork_params(params, num_inputs, compute_dtype=jnp.bfloat16):
    """Pack the six PyTorch-layout Linear layers into fused, transposed-math
    kernel operands. Weights stay in the native (out, in) layout."""
    H = params["w1"].shape[0]
    f32 = jnp.float32

    # Layer 1: stack Q1/Q2 along the output axis -> (2H, d_in); split columns
    # into a state half and an action half (no wrapper concat of the inputs).
    w1f = jnp.concatenate([params["w1"], params["w4"]], axis=0)   # (2H, d_in)
    w1s = w1f[:, :num_inputs]                                     # (2H, n_in)
    w1a = w1f[:, num_inputs:]                                     # (2H, n_act)
    b1 = jnp.concatenate([params["b1"], params["b4"]]).reshape(2 * H, 1)

    # Layer 2: block-diagonal (2H, 2H) = diag(W2, W5).
    z = jnp.zeros((H, H), f32)
    w2 = jnp.concatenate(
        [jnp.concatenate([params["w2"], z], axis=1),
         jnp.concatenate([z, params["w5"]], axis=1)], axis=0)
    b2 = jnp.concatenate([params["b2"], params["b5"]]).reshape(2 * H, 1)

    # Layer 3: (2, 2H); row 0 <- W3 (first H cols), row 1 <- W6 (last H cols).
    z1 = jnp.zeros((1, H), f32)
    w3 = jnp.concatenate(
        [jnp.concatenate([params["w3"], z1], axis=1),
         jnp.concatenate([z1, params["w6"]], axis=1)], axis=0)
    b3 = jnp.concatenate([params["b3"], params["b6"]]).reshape(2, 1)

    return {
        "w1s": w1s.astype(compute_dtype),
        "w1a": w1a.astype(compute_dtype),
        "b1": b1.astype(f32),
        "w2": w2.astype(compute_dtype),
        "b2": b2.astype(f32),
        "w3": w3.astype(compute_dtype),
        "b3": b3.astype(f32),
    }


# -----------------------------------------------------------------------------
# Pallas wrapper
# -----------------------------------------------------------------------------
def _round_up(x, m):
    return ((x + m - 1) // m) * m


def _batch_tile(B, tile_b):
    """Lane-aligned batch tile. For B <= 128 use the full extent (single
    block == full array, so no (8,128) divisibility constraint). Otherwise use
    a multiple of 128 capped so the grid has >= 2 steps (keeps both v7x
    TensorCores busy) and at most `tile_b` lanes per step."""
    if B <= 128:
        return B
    return max(128, min(tile_b, _round_up(pl.cdiv(B, 2), 128)))


@functools.partial(jax.jit, static_argnames=("tile_b",))
def qnetwork_forward(state_t, action_t, packed, *, tile_b=2048):
    """Feature-major twin-Q forward.

    state_t:  (num_inputs, B)   -- batch on the lane (last) axis
    action_t: (num_actions, B)
    returns:  (2, B) f32; row 0 = q1, row 1 = q2 (packed, lane-dense).
    Inputs may be f32 or bf16 (bf16 halves the activation DMA bytes).
    """
    n_in, B = state_t.shape
    n_act = action_t.shape[0]

    tb = _batch_tile(B, tile_b)
    grid = (pl.cdiv(B, tb),)

    col_map = lambda i: (0, i)   # tiles over the (lane-major) batch axis
    rep_map = lambda i: (0, 0)   # weights/biases stay VMEM-resident (no re-DMA)

    in_specs = [
        pl.BlockSpec((n_in, tb), col_map),
        pl.BlockSpec((n_act, tb), col_map),
        pl.BlockSpec(packed["w1s"].shape, rep_map),
        pl.BlockSpec(packed["w1a"].shape, rep_map),
        pl.BlockSpec(packed["b1"].shape, rep_map),
        pl.BlockSpec(packed["w2"].shape, rep_map),
        pl.BlockSpec(packed["b2"].shape, rep_map),
        pl.BlockSpec(packed["w3"].shape, rep_map),
        pl.BlockSpec(packed["b3"].shape, rep_map),
    ]

    out = pl.pallas_call(
        qnetwork_kernel,
        grid=grid,
        in_specs=in_specs,
        out_specs=pl.BlockSpec((2, tb), col_map),
        out_shape=jax.ShapeDtypeStruct((2, B), jnp.float32),
        compiler_params=pltpu.CompilerParams(
            dimension_semantics=("parallel",)),  # megacore sharding on v7x
    )(state_t, action_t,
      packed["w1s"], packed["w1a"], packed["b1"],
      packed["w2"], packed["b2"],
      packed["w3"], packed["b3"])

    return out


def split_q(out_t):
    """Convenience: (2, B) -> (q1 (B, 1), q2 (B, 1)) to match the PyTorch
    return signature. Prefer consuming the packed (2, B) array directly — each
    slice here is an extra XLA copy over the output slab."""
    return out_t[0].reshape(-1, 1), out_t[1].reshape(-1, 1)


# -----------------------------------------------------------------------------
# References
# -----------------------------------------------------------------------------
def qnetwork_forward_ref_f32(state, action, params):
    """Pure-f32 JAX reference that mirrors the PyTorch forward exactly
    (batch-major (B, n) inputs, (B, 1) outputs)."""
    xu = jnp.concatenate([state, action], axis=1)
    h1 = jax.nn.relu(xu @ params["w1"].T + params["b1"])
    h1 = jax.nn.relu(h1 @ params["w2"].T + params["b2"])
    q1 = h1 @ params["w3"].T + params["b3"]
    h2 = jax.nn.relu(xu @ params["w4"].T + params["b4"])
    h2 = jax.nn.relu(h2 @ params["w5"].T + params["b5"])
    q2 = h2 @ params["w6"].T + params["b6"]
    return q1, q2


def qnetwork_forward_ref_packed(state_t, action_t, packed):
    """Reference that mirrors the kernel's fused / transposed / bf16 math."""
    cdt = packed["w1s"].dtype
    s = state_t.astype(cdt)
    a = action_t.astype(cdt)
    h = (jnp.dot(packed["w1s"], s, preferred_element_type=jnp.float32)
         + jnp.dot(packed["w1a"], a, preferred_element_type=jnp.float32)
         + packed["b1"])
    h = jnp.maximum(h, 0.0).astype(cdt)
    h = jnp.dot(packed["w2"], h, preferred_element_type=jnp.float32) + packed["b2"]
    h = jnp.maximum(h, 0.0).astype(cdt)
    out = jnp.dot(packed["w3"], h, preferred_element_type=jnp.float32) + packed["b3"]
    return out


# -----------------------------------------------------------------------------
# Main
# -----------------------------------------------------------------------------
if __name__ == "__main__":
    num_inputs, num_actions, hidden_dim = 29, 3, 32

    key = jax.random.PRNGKey(0)
    k_params, k_s1, k_a1, k_s2, k_a2 = jax.random.split(key, 5)

    params = init_qnetwork_params(k_params, num_inputs, num_actions, hidden_dim)
    packed = pack_qnetwork_params(params, num_inputs, compute_dtype=jnp.bfloat16)

    # --- Case 1: tiny batch (single grid step, block == full array extent) ---
    B1 = 8
    state1_t = jax.random.normal(k_s1, (num_inputs, B1), jnp.float32)
    action1_t = jax.random.uniform(k_a1, (num_actions, B1), jnp.float32, -1.0, 1.0)

    out1 = jax.block_until_ready(qnetwork_forward(state1_t, action1_t, packed))
    assert out1.shape == (2, B1)

    ref1 = qnetwork_forward_ref_packed(state1_t, action1_t, packed)
    assert jnp.allclose(out1, ref1, atol=1e-4), "mismatch vs packed reference"

    q1, q2 = split_q(out1)
    r1, r2 = qnetwork_forward_ref_f32(state1_t.T, action1_t.T, params)
    assert q1.shape == (B1, 1) and q2.shape == (B1, 1)
    assert jnp.allclose(q1, r1, atol=2e-3), "Q1 drift vs f32 PyTorch-style ref"
    assert jnp.allclose(q2, r2, atol=2e-3), "Q2 drift vs f32 PyTorch-style ref"

    # --- Case 2: multi-tile batch with a remainder block (grid = 2) ----------
    B2 = 200
    state2_t = jax.random.normal(k_s2, (num_inputs, B2), jnp.float32)
    action2_t = jax.random.uniform(k_a2, (num_actions, B2), jnp.float32, -1.0, 1.0)

    out2 = jax.block_until_ready(qnetwork_forward(state2_t, action2_t, packed))
    assert out2.shape == (2, B2)

    ref2 = qnetwork_forward_ref_packed(state2_t, action2_t, packed)
    assert jnp.allclose(out2, ref2, atol=1e-4), "mismatch vs packed reference (B=200)"

    r1b, r2b = qnetwork_forward_ref_f32(state2_t.T, action2_t.T, params)
    assert jnp.allclose(out2[0:1].T, r1b, atol=2e-3), "Q1 drift (B=200)"
    assert jnp.allclose(out2[1:2].T, r2b, atol=2e-3), "Q2 drift (B=200)"

    print("KERNEL_OK")
</pallas_src>

<mosaic_0001>
module attributes {stable_mosaic.version = 11 : i64} {
  func.func @qnetwork_kernel(%arg0: i32, %arg1: memref<29x8xf32, #tpu.memory_space<vmem>>, %arg2: memref<3x8xf32, #tpu.memory_space<vmem>>, %arg3: memref<64x29xbf16, #tpu.memory_space<vmem>>, %arg4: memref<64x3xbf16, #tpu.memory_space<vmem>>, %arg5: memref<64x1xf32, #tpu.memory_space<vmem>>, %arg6: memref<64x64xbf16, #tpu.memory_space<vmem>>, %arg7: memref<64x1xf32, #tpu.memory_space<vmem>>, %arg8: memref<2x64xbf16, #tpu.memory_space<vmem>>, %arg9: memref<2x1xf32, #tpu.memory_space<vmem>>, %arg10: memref<2x8xf32, #tpu.memory_space<vmem>>) attributes {dimension_semantics = [#tpu.dimension_semantics<parallel>], iteration_bounds = array<i64: 1>, scalar_prefetch = 0 : i64, scratch_operands = 0 : i64, tpu.core_type = #tpu.core_type<tc>, window_params = [{transform_indices = @transform_0, window_bounds = array<i64: 29, 8>}, {transform_indices = @transform_1, window_bounds = array<i64: 3, 8>}, {pipeline_mode = #tpu.pipeline_mode<synchronous>, transform_indices = @transform_2, window_bounds = array<i64: 64, 29>}, {pipeline_mode = #tpu.pipeline_mode<synchronous>, transform_indices = @transform_3, window_bounds = array<i64: 64, 3>}, {pipeline_mode = #tpu.pipeline_mode<synchronous>, transform_indices = @transform_4, window_bounds = array<i64: 64, 1>}, {pipeline_mode = #tpu.pipeline_mode<synchronous>, transform_indices = @transform_5, window_bounds = array<i64: 64, 64>}, {pipeline_mode = #tpu.pipeline_mode<synchronous>, transform_indices = @transform_6, window_bounds = array<i64: 64, 1>}, {pipeline_mode = #tpu.pipeline_mode<synchronous>, transform_indices = @transform_7, window_bounds = array<i64: 2, 64>}, {pipeline_mode = #tpu.pipeline_mode<synchronous>, transform_indices = @transform_8, window_bounds = array<i64: 2, 1>}, {transform_indices = @transform_9, window_bounds = array<i64: 2, 8>}]} {
    %c0 = arith.constant 0 : index
    %c0_0 = arith.constant 0 : index
    %0 = vector.load %arg1[%c0, %c0_0] : memref<29x8xf32, #tpu.memory_space<vmem>>, vector<29x8xf32>
    %1 = arith.truncf %0 : vector<29x8xf32> to vector<29x8xbf16>
    %c0_1 = arith.constant 0 : index
    %c0_2 = arith.constant 0 : index
    %2 = vector.load %arg2[%c0_1, %c0_2] : memref<3x8xf32, #tpu.memory_space<vmem>>, vector<3x8xf32>
    %3 = arith.truncf %2 : vector<3x8xf32> to vector<3x8xbf16>
    %c0_3 = arith.constant 0 : index
    %c0_4 = arith.constant 0 : index
    %4 = vector.load %arg3[%c0_3, %c0_4] : memref<64x29xbf16, #tpu.memory_space<vmem>>, vector<64x29xbf16>
    %cst = arith.constant dense<0.000000e+00> : vector<64x8xf32>
    %5 = tpu.matmul %4, %1, %cst {dimension_numbers = #tpu.dot_dimension_numbers<[1], [0], [0], [1], [0, 0, 1, 1], [], []>} : vector<64x29xbf16>, vector<29x8xbf16>, vector<64x8xf32> -> vector<64x8xf32>
    %c0_5 = arith.constant 0 : index
    %c0_6 = arith.constant 0 : index
    %6 = vector.load %arg4[%c0_5, %c0_6] : memref<64x3xbf16, #tpu.memory_space<vmem>>, vector<64x3xbf16>
    %cst_7 = arith.constant dense<0.000000e+00> : vector<64x8xf32>
    %7 = tpu.matmul %6, %3, %cst_7 {dimension_numbers = #tpu.dot_dimension_numbers<[1], [0], [0], [1], [0, 0, 1, 1], [], []>} : vector<64x3xbf16>, vector<3x8xbf16>, vector<64x8xf32> -> vector<64x8xf32>
    %8 = arith.addf %5, %7 : vector<64x8xf32>
    %c0_8 = arith.constant 0 : index
    %c0_9 = arith.constant 0 : index
    %9 = vector.load %arg5[%c0_8, %c0_9] : memref<64x1xf32, #tpu.memory_space<vmem>>, vector<64x1xf32>
    %10 = vector.broadcast %9 : vector<64x1xf32> to vector<64x8xf32>
    %11 = arith.addf %8, %10 : vector<64x8xf32>
    %cst_10 = arith.constant 0.000000e+00 : f32
    %12 = vector.broadcast %cst_10 : f32 to vector<64x8xf32>
    %13 = arith.maximumf %11, %12 : vector<64x8xf32>
    %14 = arith.truncf %13 : vector<64x8xf32> to vector<64x8xbf16>
    %c0_11 = arith.constant 0 : index
    %c0_12 = arith.constant 0 : index
    %15 = vector.load %arg6[%c0_11, %c0_12] : memref<64x64xbf16, #tpu.memory_space<vmem>>, vector<64x64xbf16>
    %cst_13 = arith.constant dense<0.000000e+00> : vector<64x8xf32>
    %16 = tpu.matmul %15, %14, %cst_13 {dimension_numbers = #tpu.dot_dimension_numbers<[1], [0], [0], [1], [0, 0, 1, 1], [], []>} : vector<64x64xbf16>, vector<64x8xbf16>, vector<64x8xf32> -> vector<64x8xf32>
    %c0_14 = arith.constant 0 : index
    %c0_15 = arith.constant 0 : index
    %17 = vector.load %arg7[%c0_14, %c0_15] : memref<64x1xf32, #tpu.memory_space<vmem>>, vector<64x1xf32>
    %18 = vector.broadcast %17 : vector<64x1xf32> to vector<64x8xf32>
    %19 = arith.addf %16, %18 : vector<64x8xf32>
    %cst_16 = arith.constant 0.000000e+00 : f32
    %20 = vector.broadcast %cst_16 : f32 to vector<64x8xf32>
    %21 = arith.maximumf %19, %20 : vector<64x8xf32>
    %22 = arith.truncf %21 : vector<64x8xf32> to vector<64x8xbf16>
    %c0_17 = arith.constant 0 : index
    %c0_18 = arith.constant 0 : index
    %23 = vector.load %arg8[%c0_17, %c0_18] : memref<2x64xbf16, #tpu.memory_space<vmem>>, vector<2x64xbf16>
    %cst_19 = arith.constant dense<0.000000e+00> : vector<2x8xf32>
    %24 = tpu.matmul %23, %22, %cst_19 {dimension_numbers = #tpu.dot_dimension_numbers<[1], [0], [0], [1], [0, 0, 1, 1], [], []>} : vector<2x64xbf16>, vector<64x8xbf16>, vector<2x8xf32> -> vector<2x8xf32>
    %c0_20 = arith.constant 0 : index
    %c0_21 = arith.constant 0 : index
    %25 = vector.load %arg9[%c0_20, %c0_21] : memref<2x1xf32, #tpu.memory_space<vmem>>, vector<2x1xf32>
    %26 = vector.broadcast %25 : vector<2x1xf32> to vector<2x8xf32>
    %27 = arith.addf %24, %26 : vector<2x8xf32>
    %c0_22 = arith.constant 0 : index
    %c0_23 = arith.constant 0 : index
    %28 = vector.load %arg10[%c0_22, %c0_23] : memref<2x8xf32, #tpu.memory_space<vmem>>, vector<2x8xf32>
    tpu.vector_store %arg10[%c0_22, %c0_23], %27 {strides = array<i32>} : memref<2x8xf32, #tpu.memory_space<vmem>>, vector<2x8xf32>,
    return
  }
  func.func @transform_0(%arg0: i32) -> (i32, i32) {
    %c0_i32 = arith.constant 0 : i32
    %c0_i32_0 = arith.constant 0 : i32
    return %c0_i32, %arg0 : i32, i32
  }
  func.func @transform_1(%arg0: i32) -> (i32, i32) {
    %c0_i32 = arith.constant 0 : i32
    %c0_i32_0 = arith.constant 0 : i32
    return %c0_i32, %arg0 : i32, i32
  }
  func.func @transform_2(%arg0: i32) -> (i32, i32) {
    %c0_i32 = arith.constant 0 : i32
    %c0_i32_0 = arith.constant 0 : i32
    %c0_i32_1 = arith.constant 0 : i32
    return %c0_i32, %c0_i32_0 : i32, i32
  }
  func.func @transform_3(%arg0: i32) -> (i32, i32) {
    %c0_i32 = arith.constant 0 : i32
    %c0_i32_0 = arith.constant 0 : i32
    %c0_i32_1 = arith.constant 0 : i32
    return %c0_i32, %c0_i32_0 : i32, i32
  }
  func.func @transform_4(%arg0: i32) -> (i32, i32) {
    %c0_i32 = arith.constant 0 : i32
    %c0_i32_0 = arith.constant 0 : i32
    %c0_i32_1 = arith.constant 0 : i32
    return %c0_i32, %c0_i32_0 : i32, i32
  }
  func.func @transform_5(%arg0: i32) -> (i32, i32) {
    %c0_i32 = arith.constant 0 : i32
    %c0_i32_0 = arith.constant 0 : i32
    %c0_i32_1 = arith.constant 0 : i32
    return %c0_i32, %c0_i32_0 : i32, i32
  }
  func.func @transform_6(%arg0: i32) -> (i32, i32) {
    %c0_i32 = arith.constant 0 : i32
    %c0_i32_0 = arith.constant 0 : i32
    %c0_i32_1 = arith.constant 0 : i32
    return %c0_i32, %c0_i32_0 : i32, i32
  }
  func.func @transform_7(%arg0: i32) -> (i32, i32) {
    %c0_i32 = arith.constant 0 : i32
    %c0_i32_0 = arith.constant 0 : i32
    %c0_i32_1 = arith.constant 0 : i32
    return %c0_i32, %c0_i32_0 : i32, i32
  }
  func.func @transform_8(%arg0: i32) -> (i32, i32) {
    %c0_i32 = arith.constant 0 : i32
    %c0_i32_0 = arith.constant 0 : i32
    %c0_i32_1 = arith.constant 0 : i32
    return %c0_i32, %c0_i32_0 : i32, i32
  }
  func.func @transform_9(%arg0: i32) -> (i32, i32) {
    %c0_i32 = arith.constant 0 : i32
    %c0_i32_0 = arith.constant 0 : i32
    return %c0_i32, %arg0 : i32, i32
  }
}

</mosaic_0001>

<bundles_post_ra>
// kernel: qnetwork_forward.1
= control target key start
LH: loop header
LB: loop body
LE: loop exit
PB: predicated region body
PF: predicated region fallthrough
CT: control target
= control target key end

     0   :  { %vm91_vm0 = vcmask 1040384   ;;  %vm92_vm1 = vcmask 1041408   ;;  %v708_v3 = vmov 65535   ;;  %vm196_vm2 = vcmask 1045504   ;;  %s884_s0 = inlined_call_operand.vmem [shape: f32[29,8], index: 0, kind: input, shape index: {}]   ;;  %s885_s1 = inlined_call_operand.vmem [shape: f32[3,8], index: 1, kind: input, shape index: {}]   ;;  %s886_s2 = inlined_call_operand.vmem [shape: bf16[64,29], index: 2, kind: input, shape index: {}]   ;;  %s887_s3 = inlined_call_operand.vmem [shape: bf16[64,3], index: 3, kind: input, shape index: {}]   ;;  %s888_s4 = inlined_call_operand.vmem [shape: f32[64,1], index: 4, kind: input, shape index: {}]   ;;  %s889_s5 = inlined_call_operand.vmem [shape: bf16[64,64], index: 5, kind: input, shape index: {}]   ;;  %s890_s6 = inlined_call_operand.vmem [shape: f32[64,1], index: 6, kind: input, shape index: {}]   ;;  %s891_s7 = inlined_call_operand.vmem [shape: bf16[2,64], index: 7, kind: input, shape index: {}]   ;;  %s892_s8 = inlined_call_operand.vmem [shape: f32[2,1], index: 8, kind: input, shape index: {}]   ;;  %s893_s9 = inlined_call_operand.hbm [shape: f32[2,8], index: 9, kind: output, shape index: {}]  }
   0x1   :  { %v40_v0 = vld [vmem:[%s885_s1] sm:$0x7]  ;;  %v36_v1 = vld [vmem:[%s884_s0 + $0x10] sm:$0xff]  ;;  %v93_v4 = vsel %vm91_vm0, 4294967295, %v708_v3  ;;  %v37_v5 = vld [vmem:[%s884_s0 + $0x18] sm:$0x1f] }
   0x2   :  { %v41_v2 = vpack.c.bf16 %v40_v0, %v40_v0  ;;  %vm197_vm3 = vcmask 1046528   ;;  %v674_v6 = vld [vmem:[%s887_s3] sm:$0xff]   ;;  %v94_v7 = vsel %vm92_vm1, %v93_v4, 0  ;;  %v39_v8 = vpack.c.bf16 %v37_v5, %v36_v1  ;;  %v675_v13 = vld [vmem:[%s887_s3 + $0x8] sm:$0xff]   ;;  %v678_v19 = vld [vmem:[%s887_s3 + $0x10] sm:$0xff]  }
   0x3   :  { %v198_v9 = vsel %vm196_vm2, 4294967295, %v708_v3  ;;  %vm78_vm4 = vcmask 23552   ;;  %v34_v14 = vld [vmem:[%s884_s0] sm:$0xff]  ;;  %v35_v15 = vld [vmem:[%s884_s0 + $0x8] sm:$0xff]  ;;  %vm183_vm5 = vcmask 236544   ;;  %v709_v18 = vmov 0  }
   0x4   :  { %v96_v10 = vand.u32 %v94_v7, %v41_v2  ;;  %v199_v11 = vsel %vm197_vm3, %v198_v9, 0  ;;  %619 = vmatprep.mubr.msk.bf16.mxu0 %vm78_vm4, %v674_v6  ;;  %v38_v16 = vpack.c.bf16 %v35_v15, %v34_v14  ;;  %v676_v17 = vld [vmem:[%s886_s2] sm:$0xff]   ;;  %672 = vset.pattern.permute.xlu0 %v709_v18  ;;  %v677_v20 = vld [vmem:[%s886_s2 + $0x8] sm:$0xff]   ;;  %v680_v21 = vld [vmem:[%s886_s2 + $0x10] sm:$0xff]  }
   0x5   :  { %v201_v12 = vand.u32 %v199_v11, %v39_v8  ;;  %631 = vmatprep.mubr.msk.bf16.mxu1 %vm183_vm5, %v676_v17  ;;  %673 = vset.pattern.permute.xlu1 %v709_v18  ;;  %v274_v22 = vld [vmem:[%s888_s4 + $0x30] sm:$0xff]  ;;  %v272_v23 = vld [vmem:[%s888_s4 + $0x20] sm:$0xff]  ;;  %v679_v24 = vld [vmem:[%s887_s3 + $0x18] sm:$0xff]  }
   0x6   :  { %617 = vmatprep.subr.bf16.mxu0 %v96_v10  ;;  %308 = vperm.xlu0 %672, %v274_v22   ;;  %v275_v25 = vld [vmem:[%s888_s4 + $0x38] sm:$0xff]  ;;  %v273_v26 = vld [vmem:[%s888_s4 + $0x28] sm:$0xff]  ;;  %v270_v28 = vld [vmem:[%s888_s4 + $0x10] sm:$0xff] }
   0x7   :  { %627 = vmatprep.subr.bf16.mxu1 %v201_v12  ;;  %618 = vmatpush3.bf16.msra.mxu0 %v96_v10  ;;  %v681_v27 = vld [vmem:[%s886_s2 + $0x18] sm:$0xff]  }
   0x8   :  { %628 = vmatpush3.bf16.msra.mxu1 %v201_v12  ;;  %298 = vperm.xlu1 %673, %v272_v23   ;;  %v271_v29 = vld [vmem:[%s888_s4 + $0x18] sm:$0xff] }
   0x9   :  { %629 = vmatprep.subr.bf16.mxu1 %v38_v16 }
   0xa   :  { %620 = vmatmul.mubr.msk.bf16.vlgmr.msra.gmra.mxu0 %vm78_vm4, %v675_v13  ;;  %313 = vperm.xlu0 %672, %v275_v25  }
   0xb   :  { %623 = vmatprep.mubr.msk.bf16.mxu0 %vm78_vm4, %v678_v19 }
   0xc   :  { %630 = vmatpush3.bf16.msra.mxu1 %v38_v16  ;;  %303 = vperm.xlu1 %673, %v273_v26  }
   0xf   :  { %632 = vmatmul.mubr.msk.bf16.vlgmr.msra.gmra.mxu1 %vm183_vm5, %v677_v20 }
  0x10   :  { %635 = vmatprep.mubr.msk.bf16.mxu1 %vm183_vm5, %v680_v21 }
  0x12   :  { %624 = vmatmul.mubr.msk.bf16.gmra.mxu0 %vm78_vm4, %v679_v24 }
  0x13   :  { %14 = vsyncpa [#allocation3], 0  ;;  %288 = vperm.xlu0 %672, %v270_v28   ;;  %293 = vperm.xlu1 %673, %v271_v29   ;;  %v268_v30 = vld [vmem:[%s888_s4] sm:$0xff]  ;;  %v269_v31 = vld [vmem:[%s888_s4 + $0x8] sm:$0xff]  ;;  %vm412_vm6 = vcmask 523264   ;;  %vm711_vm7 = vmmov 0  }
  0x14   :  { %v350_v32 = vld [vmem:[%s890_s6 + $0x30] sm:$0xff]  ;;  %v351_v33 = vld [vmem:[%s890_s6 + $0x38] sm:$0xff]  ;;  %v348_v34 = vld [vmem:[%s890_s6 + $0x20] sm:$0xff]  ;;  %s712_s24 = smov [#allocation2]   ;;  %vm552_vm8 = vcmask 58368  }
  0x15   :  { %v349_v35 = vld [vmem:[%s890_s6 + $0x28] sm:$0xff]  ;;  %v346_v36 = vld [vmem:[%s890_s6 + $0x10] sm:$0xff]  ;;  %v347_v37 = vld [vmem:[%s890_s6 + $0x18] sm:$0xff]  ;;  %s560_s25 = sshll.u32 %s712_s24, 4  ;;  %s561_s25 = int_to_ptr.vmem [resolvable:$true] %s560_s25 }
  0x16   :  { %v344_v38 = vld [vmem:[%s890_s6] sm:$0xff]  ;;  %v345_v39 = vld [vmem:[%s890_s6 + $0x8] sm:$0xff]  ;;  %s686_s0 = scalar_lea.vmem %s561_s25, 32  ;;  %p691_p1 = scmp.lt.s32.totalorder %s561_s25, %s561_s25 }
  0x17   :  { %636 = vmatmul.mubr.msk.bf16.gmra.mxu1 %vm183_vm5, %v681_v27  ;;  %278 = vperm.xlu0 %672, %v268_v30   ;;  %v503_v40 = vld [vmem:[%s892_s8] sm:$0x3]  ;;  %v683_v30 = vld [vmem:[%s889_s5 + $0x8] sm:$0xff]   ;;  %p687_p0 = scmp.ne.s32.totalorder %s561_s25, %s686_s0  ;;  %p692_p2 = scmp.lt.s32.totalorder %s686_s0, %s686_s0 }
  0x18   :  { %283 = vperm.xlu1 %673, %v269_v31   ;;  %v682_v41 = vld [vmem:[%s889_s5] sm:$0xff]   ;;  %v684_v31 = vld [vmem:[%s889_s5 + $0x10] sm:$0xff]  }
  0x19   :  { %647 = vmatprep.mubr.msk.bf16.mxu0 %vm412_vm6, %v682_v41  ;;  %p693_p3 = por %p692_p2, %p691_p1 }
  0x1b   :  { %384 = vperm.xlu0 %672, %v350_v32   ;;  %v685_v32 = vld [vmem:[%s889_s5 + $0x18] sm:$0xff]   ;;  %p694_p4 = pnand %p693_p3, %p687_p0 }
  0x1c   :  { %389 = vperm.xlu1 %673, %v351_v33   ;;  %v710_v33 = vmov 0.0  }
  0x1d   :  { %655 = vmatprep.subr.bf16.mxu1 %v710_v33  ;;  %663 = vmatprep.mubr.msk.bf16.mxu1 %vm711_vm7, %v710_v33 }
  0x1f   :  { %374 = vperm.xlu0 %672, %v348_v34  }
  0x20   :  { %379 = vperm.xlu1 %673, %v349_v35  }
  0x23   :  { %364 = vperm.xlu0 %672, %v346_v36  }
  0x24   :  { %369 = vperm.xlu1 %673, %v347_v37  }
  0x27   :  { %354 = vperm.xlu0 %672, %v344_v38  }
  0x28   :  { %359 = vperm.xlu1 %673, %v345_v39  }
  0x2b   :  { %506 = vperm.xlu0 %672, %v503_v40  }
  0x81   :  { %v309_v49 = vpop.permute.xlu0 %308 }
  0x83   :  { %v299_v46 = vpop.permute.xlu1 %298 }
  0x85   :  { %v314_v56 = vpop.permute.xlu0 %313 }
  0x87   :  { %v304_v54 = vpop.permute.xlu1 %303 }
  0x8e   :  { %v294_v63 = vpop.permute.xlu1 %293  ;;  %v289_v8 = vpop.permute.xlu0 %288 }
  0x92   :  { %v279_v23 = vpop.permute.xlu0 %278 }
  0x93   :  { %v284_v19 = vpop.permute.xlu1 %283 }
  0x96   :  { %v385_v37 = vpop.permute.xlu0 %384 }
  0x97   :  { %v390_v35 = vpop.permute.xlu1 %389 }
  0x9b   :  { %v380_v40 = vpop.permute.xlu1 %379 }
  0xca   :  { %v621_v42 = vpop.f32.mrf.mxu0 }
  0xcc   :  { %v132_v43 = vpop.f32.mrf.mxu0 }
  0xce   :  { %v622_v44 = vpop.f32.mrf.mxu0 }
  0xcf   :  { %v633_v45 = vpop.f32.mrf.mxu1 }
  0xd0   :  { %v135_v47 = vpop.f32.mrf.mxu0  ;;  %v246_v2 = vadd.f32 %v633_v45, %v621_v42  ;;  %v375_v42 = vpop.permute.xlu0 %374 }
  0xd1   :  { %v237_v48 = vpop.f32.mrf.mxu1 }
  0xd2   :  { %v625_v50 = vpop.f32.mrf.mxu0  ;;  %v318_v14 = vadd.f32 %v289_v8, %v246_v2  ;;  %v238_v15 = vadd.f32 %v237_v48, %v132_v43 }
  0xd3   :  { %v634_v51 = vpop.f32.mrf.mxu1 }
  0xd4   :  { %v148_v52 = vpop.f32.mrf.mxu0  ;;  %v249_v61 = vadd.f32 %v634_v51, %v622_v44  ;;  %v326_v24 = vmax.f32 %v318_v14, 0.0  ;;  %v316_v25 = vadd.f32 %v279_v23, %v238_v15 }
  0xd5   :  { %v240_v53 = vpop.f32.mrf.mxu1 }
  0xd6   :  { %v626_v58 = vpop.f32.mrf.mxu0  ;;  %v319_v9 = vadd.f32 %v294_v63, %v249_v61  ;;  %v241_v10 = vadd.f32 %v240_v53, %v135_v47  ;;  %v324_v28 = vmax.f32 %v316_v25, 0.0  ;;  %v370_v47 = vpop.permute.xlu1 %369 }
  0xd7   :  { %v637_v55 = vpop.f32.mrf.mxu1  ;;  %v365_v53 = vpop.permute.xlu0 %364 }
  0xd8   :  { %v262_v57 = vadd.f32 %v637_v55, %v625_v50  ;;  %v151_v3 = vpop.f32.mrf.mxu0  ;;  %v327_v20 = vmax.f32 %v319_v9, 0.0  ;;  %v317_v21 = vadd.f32 %v284_v19, %v241_v10 }
  0xd9   :  { %v253_v59 = vpop.f32.mrf.mxu1 }
  0xda   :  { %v254_v60 = vadd.f32 %v253_v59, %v148_v52  ;;  %v322_v0 = vadd.f32 %v309_v49, %v262_v57  ;;  %v325_v26 = vmax.f32 %v317_v21, 0.0  ;;  %v333_v27 = vpack.c.bf16 %v327_v20, %v326_v24  ;;  %v360_v59 = vpop.permute.xlu1 %359 }
  0xdb   :  { %v638_v62 = vpop.f32.mrf.mxu1  ;;  %v355_v63 = vpop.permute.xlu0 %354 }
  0xdc   :  { %v265_v1 = vadd.f32 %v638_v62, %v626_v58  ;;  %v320_v5 = vadd.f32 %v299_v46, %v254_v60  ;;  %v330_v11 = vmax.f32 %v322_v0, 0.0  ;;  %v332_v29 = vpack.c.bf16 %v325_v26, %v324_v28 }
  0xdd   :  { %v256_v4 = vpop.f32.mrf.mxu1 }
  0xde   :  { %v323_v6 = vadd.f32 %v314_v56, %v265_v1  ;;  %v257_v7 = vadd.f32 %v256_v4, %v151_v3  ;;  %v328_v16 = vmax.f32 %v320_v5, 0.0 }
  0xe0   :  { %v331_v12 = vmax.f32 %v323_v6, 0.0  ;;  %v321_v13 = vadd.f32 %v304_v54, %v257_v7  ;;  %v502_v6 = vld [vmem:[%s891_s7] sm:$0x1]  ;;  %v507_v7 = vpop.permute.xlu0 %506 }
  0xe2   :  { %v329_v17 = vmax.f32 %v321_v13, 0.0  ;;  %v335_v18 = vpack.c.bf16 %v331_v12, %v330_v11 }
  0xe4   :  { %639 = vmatprep.subr.bf16.mxu0 %v335_v18  ;;  %v334_v22 = vpack.c.bf16 %v329_v17, %v328_v16 }
  0xe5   :  { %640 = vmatpush3.bf16.msra.mxu0 %v335_v18 }
  0xe6   :  { %641 = vmatprep.subr.bf16.mxu0 %v334_v22 }
  0xe9   :  { %642 = vmatpush3.bf16.msra.mxu0 %v334_v22 }
  0xea   :  { %643 = vmatprep.subr.bf16.mxu0 %v333_v27 }
  0xed   :  { %644 = vmatpush3.bf16.msra.mxu0 %v333_v27 }
  0xee   :  { %645 = vmatprep.subr.bf16.mxu0 %v332_v29 }
  0xf1   :  { %646 = vmatpush3.bf16.msra.mxu0 %v332_v29 }
  0xf4   :  { %648 = vmatmul.mubr.msk.bf16.vlgmr.msra.gmra.mxu0 %vm412_vm6, %v683_v30 }
  0xf5   :  { %651 = vmatprep.mubr.msk.bf16.mxu0 %vm412_vm6, %v684_v31 }
  0xfc   :  { %652 = vmatmul.mubr.msk.bf16.gmra.mxu0 %vm412_vm6, %v685_v32 }
 0x1b4   :  { %v649_v34 = vpop.f32.mrf.mxu0 }
 0x1b5   :  { %v468_v57 = vadd.f32 %v649_v34, %v365_v53 }
 0x1b6   :  { %v459_v36 = vpop.f32.mrf.mxu0 }
 0x1b7   :  { %v492_v0 = vmax.f32 %v468_v57, 0.0  ;;  %v460_v1 = vadd.f32 %v459_v36, %v355_v63 }
 0x1b8   :  { %v650_v38 = vpop.f32.mrf.mxu0 }
 0x1b9   :  { %v471_v54 = vadd.f32 %v650_v38, %v370_v47  ;;  %v490_v4 = vmax.f32 %v460_v1, 0.0 }
 0x1ba   :  { %v462_v39 = vpop.f32.mrf.mxu0 }
 0x1bb   :  { %v493_v60 = vmax.f32 %v471_v54, 0.0  ;;  %v463_v61 = vadd.f32 %v462_v39, %v360_v59 }
 0x1bc   :  { %v653_v41 = vpop.f32.mrf.mxu0 }
 0x1bd   :  { %v484_v44 = vadd.f32 %v653_v41, %v385_v37  ;;  %v499_v2 = vpack.c.bf16 %v493_v60, %v492_v0  ;;  %v491_v3 = vmax.f32 %v463_v61, 0.0 }
 0x1be   :  { %v475_v43 = vpop.f32.mrf.mxu0 }
 0x1bf   :  { %v496_v49 = vmax.f32 %v484_v44, 0.0  ;;  %v476_v50 = vadd.f32 %v475_v43, %v375_v42  ;;  %v498_v5 = vpack.c.bf16 %v491_v3, %v490_v4 }
 0x1c0   :  { %v654_v45 = vpop.f32.mrf.mxu0 }
 0x1c1   :  { %v487_v46 = vadd.f32 %v654_v45, %v390_v35  ;;  %v494_v58 = vmax.f32 %v476_v50, 0.0 }
 0x1c2   :  { %v478_v48 = vpop.f32.mrf.mxu0 }
 0x1c3   :  { %v497_v51 = vmax.f32 %v487_v46, 0.0  ;;  %v479_v52 = vadd.f32 %v478_v48, %v380_v40 }
 0x1c5   :  { %v501_v55 = vpack.c.bf16 %v497_v51, %v496_v49  ;;  %v495_v56 = vmax.f32 %v479_v52, 0.0 }
 0x1c7   :  { %656 = vmatpush3.bf16.msra.mxu1 %v501_v55  ;;  %v500_v62 = vpack.c.bf16 %v495_v56, %v494_v58 }
 0x1c8   :  { %657 = vmatprep.subr.bf16.mxu1 %v710_v33 }
 0x1cb   :  { %658 = vmatpush3.bf16.msra.mxu1 %v500_v62 }
 0x1cc   :  { %659 = vmatprep.subr.bf16.mxu1 %v710_v33 }
 0x1cf   :  { %660 = vmatpush3.bf16.msra.mxu1 %v499_v2 }
 0x1d0   :  { %661 = vmatprep.subr.bf16.mxu1 %v710_v33 }
 0x1d3   :  { %662 = vmatpush3.bf16.msra.mxu1 %v498_v5 }
 0x1d6   :  { %664 = vmatmul.mubr.msk.bf16.vlgmr.msra.gmra.mxu1 %vm412_vm6, %v502_v6 }
 0x296   :  { %v546_v8 = vpop.f32.mrf.mxu1 }
 0x297   :  { %v547_v9 = vadd.f32 %v546_v8, %v507_v7 }
 0x298   :  { %v665_v10 = vpop.f32.mrf.mxu1 }
 0x299   :  { %553 = vst.msk [vmem:[#allocation2] sm:$0x3] %vm552_vm8, %v547_v9 }
 0x29a   :  { %v549_v11 = vpop.f32.mrf.mxu1 }
 0x29b   :  { %697 = shalt.err (!%p694_p4)
}
 0x29c   :  { %563 = dma.vmem_to_hbm [thread:$0]  %s561_s25, 32, %s893_s9, [#allocation3]   ;;  %v666_v12 = vpop.f32.mrf.mxu1 }
 0x29d   :  { %706 = dma.done.wait [#allocation3], 32  }
 0x29e   :  { %707 = vsyncadd [#allocation3], 4294967264 }
 0x29f   :  { %567 = vsyncpa [#allocation3], 1 }

</bundles_post_ra>
